<compile_context>
chip_gen: v7x
topology: tpu7x:2x2x1
jax: 0.10.0
libtpu: 0.0.40
codegen_flags: <defaults>
</compile_context>

<pallas_src>
import numpy as np
import jax
import jax.numpy as jnp
from jax.experimental import pallas as pl
from jax.experimental.pallas import tpu as pltpu

jax.config.update("jax_default_matmul_precision", "highest")


# ------------------------------ Pallas kernel --------------------------------

def self_attn_kernel(fts_ref, xyz_ref, wcombT_ref, wr_ref, sT_ref, u_ref, b_ref,
                     wfT_ref, out_ref):
    # Block shapes (per batch b):
    #   fts_ref   : (1, 3N, C_in)   channels-last raw fts, direction-major rows
    #   xyz_ref   : (1, N, 3)
    #   wcombT_ref: (C_in, HC)      HC = H*C_qkv, folded (Wq_h @ We)^T stacked
    #   wr_ref    : (1, HC)         per-head Wr rows
    #   sT_ref    : (3, HC)         per-head (Wz@Wr) broadcast to HC columns
    #   u_ref     : (1, HC)         per-head (Wfwd@Wr)/scale
    #   b_ref     : (1, HC)         per-head bias/scale
    #   wfT_ref   : (HC, H*C_f)     block-diagonal stacked Wf^T
    #   out_ref   : (1, 3, H*C_f)   lane-dense output slab
    n = xyz_ref.shape[1]

    x = fts_ref[0]                                    # (3N, C_in)
    xyz = xyz_ref[0]                                  # (N, 3)

    # q (== k == v before position) for all heads in one MXU push.
    q = jnp.dot(x, wcombT_ref[...],
                preferred_element_type=jnp.float32)   # (3N, HC)

    # t[n, h*C+c] = sum_j xyz[n,j] * (Wz_h @ Wr_h)[j]
    t = jnp.dot(xyz, sT_ref[...],
                preferred_element_type=jnp.float32)   # (N, HC)

    wr = wr_ref[...]                                  # (1, HC)
    u = u_ref[...]                                    # (1, HC)
    b = b_ref[...]                                    # (1, HC)

    rows = []
    for k in range(3):                                # unrolled over vector dim
        xyz_k = xyz[:, k:k + 1]                       # (N, 1)
        # attn logits (already /scale via u, b): rank-1 in channels.
        logits = (xyz_k * t) * u + b                  # (N, HC)
        m = jnp.max(logits, axis=0, keepdims=True)
        e = jnp.exp(logits - m)
        denom = jnp.sum(e, axis=0, keepdims=True)
        sm = e * pl.reciprocal(denom, approx=True)    # softmax over points N
        v = q[k * n:(k + 1) * n, :] + xyz_k * wr      # v = q + pos_rel
        rows.append(jnp.sum(sm * v, axis=0, keepdims=True))   # (1, HC)

    resi = jnp.concatenate(rows, axis=0)              # (3, HC)

    # vnn_f for all heads at once via block-diagonal Wf^T -> lane-dense store.
    out_ref[0] = jnp.dot(resi, wfT_ref[...],
                         preferred_element_type=jnp.float32
                         ).astype(out_ref.dtype)


# ------------------------- host-side weight folding --------------------------

def prepare_params(p):
    """Fold / transpose / stack all weights ONCE (constants across forwards)."""
    H, C_qkv, C_e = p["Wq"].shape
    C_in = p["We"].shape[1]
    C_f = p["Wf"].shape[1]
    scale = float(np.sqrt(C_qkv))

    # vnn_e folded into per-head query weight, heads stacked on lanes.
    wcomb = jnp.einsum('hqe,ec->hqc', p["Wq"], p["We"])            # (H,C_qkv,C_in)
    wcombT = jnp.transpose(wcomb, (2, 0, 1)).reshape(C_in, H * C_qkv)

    wr = p["Wr"][:, :, 0]                                          # (H, C_qkv)
    wr_row = wr.reshape(1, H * C_qkv)

    # s_h = Wz_h @ Wr_h  (3,)  -> broadcast to every channel of head h.
    s = jnp.einsum('hjc,hc->hj', p["Wz"], wr)                      # (H, 3)
    sfullT = jnp.repeat(jnp.transpose(s), C_qkv, axis=1)           # (3, H*C_qkv)

    # u_h = Wfwd_h @ Wr_h ; fold the 1/scale of the softmax into u and bias.
    u = jnp.einsum('hoc,hc->ho', p["Wfwd"], wr)                    # (H, C_qkv)
    u_row = (u / scale).reshape(1, H * C_qkv)
    b_row = (p["bfwd"] / scale).reshape(1, H * C_qkv)

    # Block-diagonal stacked Wf^T so all heads finish in one matmul.
    wfT = jnp.transpose(p["Wf"], (0, 2, 1))                        # (H,C_qkv,C_f)
    wfT_bd = jnp.zeros((H * C_qkv, H * C_f), jnp.float32)
    for h in range(H):
        wfT_bd = wfT_bd.at[h * C_qkv:(h + 1) * C_qkv,
                           h * C_f:(h + 1) * C_f].set(wfT[h])

    return {"wcombT": wcombT, "wr_row": wr_row, "sfullT": sfullT,
            "u_row": u_row, "b_row": b_row, "wfT_bd": wfT_bd,
            "H": H, "C_qkv": C_qkv, "C_f": C_f}


# --------------------------------- wrapper ------------------------------------

def self_attention_forward(fts, xyz, prep):
    """fts: (B, C_in, 3, N), xyz: (B, N, 3) -> (B, H*C_f, 3)."""
    B, C_in, three, N = fts.shape
    assert three == 3
    HC = prep["wcombT"].shape[1]
    HCf = prep["wfT_bd"].shape[1]

    # Channels-last, direction-major rows: (B, 3N, C_in).
    fts_cl = jnp.transpose(fts, (0, 2, 3, 1)).reshape(B, 3 * N, C_in)

    out = pl.pallas_call(
        self_attn_kernel,
        out_shape=jax.ShapeDtypeStruct((B, 3, HCf), jnp.float32),
        grid=(B,),
        in_specs=[
            pl.BlockSpec((1, 3 * N, C_in), lambda b: (b, 0, 0)),
            pl.BlockSpec((1, N, 3), lambda b: (b, 0, 0)),
            pl.BlockSpec((C_in, HC), lambda b: (0, 0)),
            pl.BlockSpec((1, HC), lambda b: (0, 0)),
            pl.BlockSpec((3, HC), lambda b: (0, 0)),
            pl.BlockSpec((1, HC), lambda b: (0, 0)),
            pl.BlockSpec((1, HC), lambda b: (0, 0)),
            pl.BlockSpec((HC, HCf), lambda b: (0, 0)),
        ],
        out_specs=pl.BlockSpec((1, 3, HCf), lambda b: (b, 0, 0)),
        compiler_params=pltpu.CompilerParams(
            dimension_semantics=("parallel",)),
    )(fts_cl, xyz, prep["wcombT"], prep["wr_row"], prep["sfullT"],
      prep["u_row"], prep["b_row"], prep["wfT_bd"])

    # (B, 3, H*C_f) -> PyTorch convention (B, H*C_f, 3) (heads concat on channels).
    return jnp.transpose(out, (0, 2, 1))


# --------------------------------- reference ----------------------------------

def reference_forward(fts, xyz, p):
    """Pure-JAX reference mirroring the PyTorch NCHW math (unsimplified)."""
    H = p["Wq"].shape[0]

    def vnlin(x, W):                      # VNLinear / 1x1 conv over channel dim
        return jnp.einsum('oc,bc...->bo...', W, x)

    xyz_rel = jnp.transpose(xyz[:, :, None, :], (0, 2, 3, 1))   # (B,1,3,N)
    f = vnlin(fts, p["We"])
    outs = []
    for i in range(H):
        q = vnlin(f, p["Wq"][i]); k = q; v = q
        scale = np.sqrt(k.shape[1])
        attn = q - k
        pos = vnlin(xyz_rel, p["Wr"][i])
        attn = attn + pos
        v = v + pos
        z0 = vnlin(attn, p["Wz"][i])                             # (B,3,3,N)
        attn = jnp.einsum('bijm,bjkm->bikm', attn, z0)
        attn = vnlin(attn, p["Wfwd"][i]) + p["bfwd"][i][None, :, None, None]
        attn = jax.nn.softmax(attn / scale, axis=-1)
        resi = jnp.sum(attn * v, axis=-1)                        # (B,C_qkv,3)
        outs.append(vnlin(resi, p["Wf"][i]))                     # (B,C_f,3)
    return jnp.concatenate(outs, axis=1)


# ----------------------------------- main --------------------------------------

if __name__ == "__main__":
    B, C_in, N = 2, 4, 16
    C_e, C_qkv, C_f, H = 8, 8, 8, 2

    key = jax.random.PRNGKey(0)
    ks = jax.random.split(key, 9)
    fts = jax.random.normal(ks[0], (B, C_in, 3, N), jnp.float32)
    xyz = jax.random.normal(ks[1], (B, N, 3), jnp.float32)

    params = {
        "We":   0.3 * jax.random.normal(ks[2], (C_e, C_in), jnp.float32),
        "Wq":   0.3 * jax.random.normal(ks[3], (H, C_qkv, C_e), jnp.float32),
        "Wr":   0.3 * jax.random.normal(ks[4], (H, C_qkv, 1), jnp.float32),
        "Wz":   0.3 * jax.random.normal(ks[5], (H, 3, C_qkv), jnp.float32),
        "Wfwd": 0.3 * jax.random.normal(ks[6], (H, C_qkv, C_qkv), jnp.float32),
        "bfwd": 0.1 * jax.random.normal(ks[7], (H, C_qkv), jnp.float32),
        "Wf":   0.3 * jax.random.normal(ks[8], (H, C_f, C_qkv), jnp.float32),
    }

    prep = jax.block_until_ready(prepare_params(params))   # one-time weight fold

    out = jax.block_until_ready(self_attention_forward(fts, xyz, prep))
    ref = jax.block_until_ready(reference_forward(fts, xyz, params))

    assert out.shape == (B, H * C_f, 3), out.shape
    np.testing.assert_allclose(np.asarray(out), np.asarray(ref),
                               rtol=1e-2, atol=5e-3)
    print("KERNEL_OK")
</pallas_src>

<mosaic_0001>
module attributes {stable_mosaic.version = 11 : i64} {
  func.func @self_attn_kernel(%arg0: i32, %arg1: memref<1x48x4xf32, #tpu.memory_space<vmem>>, %arg2: memref<1x16x3xf32, #tpu.memory_space<vmem>>, %arg3: memref<4x16xf32, #tpu.memory_space<vmem>>, %arg4: memref<1x16xf32, #tpu.memory_space<vmem>>, %arg5: memref<3x16xf32, #tpu.memory_space<vmem>>, %arg6: memref<1x16xf32, #tpu.memory_space<vmem>>, %arg7: memref<1x16xf32, #tpu.memory_space<vmem>>, %arg8: memref<16x16xf32, #tpu.memory_space<vmem>>, %arg9: memref<1x3x16xf32, #tpu.memory_space<vmem>>) attributes {dimension_semantics = [#tpu.dimension_semantics<parallel>], iteration_bounds = array<i64: 2>, scalar_prefetch = 0 : i64, scratch_operands = 0 : i64, tpu.core_type = #tpu.core_type<tc>, window_params = [{transform_indices = @transform_0, window_bounds = array<i64: 1, 48, 4>}, {transform_indices = @transform_1, window_bounds = array<i64: 1, 16, 3>}, {pipeline_mode = #tpu.pipeline_mode<synchronous>, transform_indices = @transform_2, window_bounds = array<i64: 4, 16>}, {pipeline_mode = #tpu.pipeline_mode<synchronous>, transform_indices = @transform_3, window_bounds = array<i64: 1, 16>}, {pipeline_mode = #tpu.pipeline_mode<synchronous>, transform_indices = @transform_4, window_bounds = array<i64: 3, 16>}, {pipeline_mode = #tpu.pipeline_mode<synchronous>, transform_indices = @transform_5, window_bounds = array<i64: 1, 16>}, {pipeline_mode = #tpu.pipeline_mode<synchronous>, transform_indices = @transform_6, window_bounds = array<i64: 1, 16>}, {pipeline_mode = #tpu.pipeline_mode<synchronous>, transform_indices = @transform_7, window_bounds = array<i64: 16, 16>}, {transform_indices = @transform_8, window_bounds = array<i64: 1, 3, 16>}]} {
    %c0 = arith.constant 0 : index
    %c0_0 = arith.constant 0 : index
    %c0_1 = arith.constant 0 : index
    %0 = vector.load %arg1[%c0, %c0_0, %c0_1] : memref<1x48x4xf32, #tpu.memory_space<vmem>>, vector<1x48x4xf32>
    %1 = vector.shape_cast %0 : vector<1x48x4xf32> to vector<48x4xf32>
    %c0_2 = arith.constant 0 : index
    %c0_3 = arith.constant 0 : index
    %c0_4 = arith.constant 0 : index
    %2 = vector.load %arg2[%c0_2, %c0_3, %c0_4] : memref<1x16x3xf32, #tpu.memory_space<vmem>>, vector<1x16x3xf32>
    %3 = vector.shape_cast %2 : vector<1x16x3xf32> to vector<16x3xf32>
    %c0_5 = arith.constant 0 : index
    %c0_6 = arith.constant 0 : index
    %4 = vector.load %arg3[%c0_5, %c0_6] : memref<4x16xf32, #tpu.memory_space<vmem>>, vector<4x16xf32>
    %cst = arith.constant dense<0.000000e+00> : vector<48x16xf32>
    %5 = tpu.matmul %1, %4, %cst {dimension_numbers = #tpu.dot_dimension_numbers<[1], [0], [0], [1], [0, 0, 1, 1], [], []>, precision = #tpu.contract_precision<fp32>} : vector<48x4xf32>, vector<4x16xf32>, vector<48x16xf32> -> vector<48x16xf32>
    %c0_7 = arith.constant 0 : index
    %c0_8 = arith.constant 0 : index
    %6 = vector.load %arg5[%c0_7, %c0_8] : memref<3x16xf32, #tpu.memory_space<vmem>>, vector<3x16xf32>
    %cst_9 = arith.constant dense<0.000000e+00> : vector<16x16xf32>
    %7 = tpu.matmul %3, %6, %cst_9 {dimension_numbers = #tpu.dot_dimension_numbers<[1], [0], [0], [1], [0, 0, 1, 1], [], []>, precision = #tpu.contract_precision<fp32>} : vector<16x3xf32>, vector<3x16xf32>, vector<16x16xf32> -> vector<16x16xf32>
    %c0_10 = arith.constant 0 : index
    %c0_11 = arith.constant 0 : index
    %8 = vector.load %arg4[%c0_10, %c0_11] : memref<1x16xf32, #tpu.memory_space<vmem>>, vector<1x16xf32>
    %c0_12 = arith.constant 0 : index
    %c0_13 = arith.constant 0 : index
    %9 = vector.load %arg6[%c0_12, %c0_13] : memref<1x16xf32, #tpu.memory_space<vmem>>, vector<1x16xf32>
    %c0_14 = arith.constant 0 : index
    %c0_15 = arith.constant 0 : index
    %10 = vector.load %arg7[%c0_14, %c0_15] : memref<1x16xf32, #tpu.memory_space<vmem>>, vector<1x16xf32>
    %11 = vector.extract_strided_slice %3 {offsets = [0, 0], sizes = [16, 1], strides = [1, 1]} : vector<16x3xf32> to vector<16x1xf32>
    %12 = vector.broadcast %11 : vector<16x1xf32> to vector<16x16xf32>
    %13 = arith.mulf %12, %7 : vector<16x16xf32>
    %14 = vector.broadcast %9 : vector<1x16xf32> to vector<16x16xf32>
    %15 = arith.mulf %13, %14 : vector<16x16xf32>
    %16 = vector.broadcast %10 : vector<1x16xf32> to vector<16x16xf32>
    %17 = arith.addf %15, %16 : vector<16x16xf32>
    %cst_16 = arith.constant dense<0xFF800000> : vector<16xf32>
    %18 = vector.multi_reduction <maximumf>, %17, %cst_16 [0] : vector<16x16xf32> to vector<16xf32>
    %19 = vector.shape_cast %18 : vector<16xf32> to vector<1x16xf32>
    %20 = vector.broadcast %19 : vector<1x16xf32> to vector<16x16xf32>
    %21 = arith.subf %17, %20 : vector<16x16xf32>
    %22 = math.exp %21 : vector<16x16xf32>
    %cst_17 = arith.constant dense<0.000000e+00> : vector<16xf32>
    %23 = vector.multi_reduction <add>, %22, %cst_17 [0] : vector<16x16xf32> to vector<16xf32>
    %24 = vector.shape_cast %23 : vector<16xf32> to vector<1x16xf32>
    %25 = tpu.reciprocal %24 {approx = true} : vector<1x16xf32> -> vector<1x16xf32>
    %26 = vector.broadcast %25 : vector<1x16xf32> to vector<16x16xf32>
    %27 = arith.mulf %22, %26 : vector<16x16xf32>
    %28 = vector.extract_strided_slice %5 {offsets = [0, 0], sizes = [16, 16], strides = [1, 1]} : vector<48x16xf32> to vector<16x16xf32>
    %29 = vector.broadcast %11 : vector<16x1xf32> to vector<16x16xf32>
    %30 = vector.broadcast %8 : vector<1x16xf32> to vector<16x16xf32>
    %31 = arith.mulf %29, %30 : vector<16x16xf32>
    %32 = arith.addf %28, %31 : vector<16x16xf32>
    %33 = arith.mulf %27, %32 : vector<16x16xf32>
    %cst_18 = arith.constant dense<0.000000e+00> : vector<16xf32>
    %34 = vector.multi_reduction <add>, %33, %cst_18 [0] : vector<16x16xf32> to vector<16xf32>
    %35 = vector.shape_cast %34 : vector<16xf32> to vector<1x16xf32>
    %36 = vector.extract_strided_slice %3 {offsets = [0, 1], sizes = [16, 1], strides = [1, 1]} : vector<16x3xf32> to vector<16x1xf32>
    %37 = vector.broadcast %36 : vector<16x1xf32> to vector<16x16xf32>
    %38 = arith.mulf %37, %7 : vector<16x16xf32>
    %39 = vector.broadcast %9 : vector<1x16xf32> to vector<16x16xf32>
    %40 = arith.mulf %38, %39 : vector<16x16xf32>
    %41 = vector.broadcast %10 : vector<1x16xf32> to vector<16x16xf32>
    %42 = arith.addf %40, %41 : vector<16x16xf32>
    %cst_19 = arith.constant dense<0xFF800000> : vector<16xf32>
    %43 = vector.multi_reduction <maximumf>, %42, %cst_19 [0] : vector<16x16xf32> to vector<16xf32>
    %44 = vector.shape_cast %43 : vector<16xf32> to vector<1x16xf32>
    %45 = vector.broadcast %44 : vector<1x16xf32> to vector<16x16xf32>
    %46 = arith.subf %42, %45 : vector<16x16xf32>
    %47 = math.exp %46 : vector<16x16xf32>
    %cst_20 = arith.constant dense<0.000000e+00> : vector<16xf32>
    %48 = vector.multi_reduction <add>, %47, %cst_20 [0] : vector<16x16xf32> to vector<16xf32>
    %49 = vector.shape_cast %48 : vector<16xf32> to vector<1x16xf32>
    %50 = tpu.reciprocal %49 {approx = true} : vector<1x16xf32> -> vector<1x16xf32>
    %51 = vector.broadcast %50 : vector<1x16xf32> to vector<16x16xf32>
    %52 = arith.mulf %47, %51 : vector<16x16xf32>
    %53 = vector.extract_strided_slice %5 {offsets = [16, 0], sizes = [16, 16], strides = [1, 1]} : vector<48x16xf32> to vector<16x16xf32>
    %54 = vector.broadcast %36 : vector<16x1xf32> to vector<16x16xf32>
    %55 = vector.broadcast %8 : vector<1x16xf32> to vector<16x16xf32>
    %56 = arith.mulf %54, %55 : vector<16x16xf32>
    %57 = arith.addf %53, %56 : vector<16x16xf32>
    %58 = arith.mulf %52, %57 : vector<16x16xf32>
    %cst_21 = arith.constant dense<0.000000e+00> : vector<16xf32>
    %59 = vector.multi_reduction <add>, %58, %cst_21 [0] : vector<16x16xf32> to vector<16xf32>
    %60 = vector.shape_cast %59 : vector<16xf32> to vector<1x16xf32>
    %61 = vector.extract_strided_slice %3 {offsets = [0, 2], sizes = [16, 1], strides = [1, 1]} : vector<16x3xf32> to vector<16x1xf32>
    %62 = vector.broadcast %61 : vector<16x1xf32> to vector<16x16xf32>
    %63 = arith.mulf %62, %7 : vector<16x16xf32>
    %64 = vector.broadcast %9 : vector<1x16xf32> to vector<16x16xf32>
    %65 = arith.mulf %63, %64 : vector<16x16xf32>
    %66 = vector.broadcast %10 : vector<1x16xf32> to vector<16x16xf32>
    %67 = arith.addf %65, %66 : vector<16x16xf32>
    %cst_22 = arith.constant dense<0xFF800000> : vector<16xf32>
    %68 = vector.multi_reduction <maximumf>, %67, %cst_22 [0] : vector<16x16xf32> to vector<16xf32>
    %69 = vector.shape_cast %68 : vector<16xf32> to vector<1x16xf32>
    %70 = vector.broadcast %69 : vector<1x16xf32> to vector<16x16xf32>
    %71 = arith.subf %67, %70 : vector<16x16xf32>
    %72 = math.exp %71 : vector<16x16xf32>
    %cst_23 = arith.constant dense<0.000000e+00> : vector<16xf32>
    %73 = vector.multi_reduction <add>, %72, %cst_23 [0] : vector<16x16xf32> to vector<16xf32>
    %74 = vector.shape_cast %73 : vector<16xf32> to vector<1x16xf32>
    %75 = tpu.reciprocal %74 {approx = true} : vector<1x16xf32> -> vector<1x16xf32>
    %76 = vector.broadcast %75 : vector<1x16xf32> to vector<16x16xf32>
    %77 = arith.mulf %72, %76 : vector<16x16xf32>
    %78 = vector.extract_strided_slice %5 {offsets = [32, 0], sizes = [16, 16], strides = [1, 1]} : vector<48x16xf32> to vector<16x16xf32>
    %79 = vector.broadcast %61 : vector<16x1xf32> to vector<16x16xf32>
    %80 = vector.broadcast %8 : vector<1x16xf32> to vector<16x16xf32>
    %81 = arith.mulf %79, %80 : vector<16x16xf32>
    %82 = arith.addf %78, %81 : vector<16x16xf32>
    %83 = arith.mulf %77, %82 : vector<16x16xf32>
    %cst_24 = arith.constant dense<0.000000e+00> : vector<16xf32>
    %84 = vector.multi_reduction <add>, %83, %cst_24 [0] : vector<16x16xf32> to vector<16xf32>
    %85 = vector.shape_cast %84 : vector<16xf32> to vector<1x16xf32>
    %86 = tpu.concatenate %35, %60, %85 in 0 : vector<1x16xf32>, vector<1x16xf32>, vector<1x16xf32> -> vector<3x16xf32>
    %c0_25 = arith.constant 0 : index
    %c0_26 = arith.constant 0 : index
    %87 = vector.load %arg8[%c0_25, %c0_26] : memref<16x16xf32, #tpu.memory_space<vmem>>, vector<16x16xf32>
    %cst_27 = arith.constant dense<0.000000e+00> : vector<3x16xf32>
    %88 = tpu.matmul %86, %87, %cst_27 {dimension_numbers = #tpu.dot_dimension_numbers<[1], [0], [0], [1], [0, 0, 1, 1], [], []>, precision = #tpu.contract_precision<fp32>} : vector<3x16xf32>, vector<16x16xf32>, vector<3x16xf32> -> vector<3x16xf32>
    %c0_28 = arith.constant 0 : index
    %c0_29 = arith.constant 0 : index
    %c0_30 = arith.constant 0 : index
    %89 = vector.load %arg9[%c0_28, %c0_29, %c0_30] : memref<1x3x16xf32, #tpu.memory_space<vmem>>, vector<1x3x16xf32>
    %90 = vector.shape_cast %89 : vector<1x3x16xf32> to vector<3x16xf32>
    %91 = vector.shape_cast %88 : vector<3x16xf32> to vector<1x3x16xf32>
    tpu.vector_store %arg9[%c0_28, %c0_29, %c0_30], %91 {strides = array<i32>} : memref<1x3x16xf32, #tpu.memory_space<vmem>>, vector<1x3x16xf32>,
    return
  }
  func.func @transform_0(%arg0: i32) -> (i32, i32, i32) {
    %c0_i32 = arith.constant 0 : i32
    %c0_i32_0 = arith.constant 0 : i32
    %c0_i32_1 = arith.constant 0 : i32
    return %arg0, %c0_i32, %c0_i32_0 : i32, i32, i32
  }
  func.func @transform_1(%arg0: i32) -> (i32, i32, i32) {
    %c0_i32 = arith.constant 0 : i32
    %c0_i32_0 = arith.constant 0 : i32
    %c0_i32_1 = arith.constant 0 : i32
    return %arg0, %c0_i32, %c0_i32_0 : i32, i32, i32
  }
  func.func @transform_2(%arg0: i32) -> (i32, i32) {
    %c0_i32 = arith.constant 0 : i32
    %c0_i32_0 = arith.constant 0 : i32
    %c0_i32_1 = arith.constant 0 : i32
    return %c0_i32, %c0_i32_0 : i32, i32
  }
  func.func @transform_3(%arg0: i32) -> (i32, i32) {
    %c0_i32 = arith.constant 0 : i32
    %c0_i32_0 = arith.constant 0 : i32
    %c0_i32_1 = arith.constant 0 : i32
    return %c0_i32, %c0_i32_0 : i32, i32
  }
  func.func @transform_4(%arg0: i32) -> (i32, i32) {
    %c0_i32 = arith.constant 0 : i32
    %c0_i32_0 = arith.constant 0 : i32
    %c0_i32_1 = arith.constant 0 : i32
    return %c0_i32, %c0_i32_0 : i32, i32
  }
  func.func @transform_5(%arg0: i32) -> (i32, i32) {
    %c0_i32 = arith.constant 0 : i32
    %c0_i32_0 = arith.constant 0 : i32
    %c0_i32_1 = arith.constant 0 : i32
    return %c0_i32, %c0_i32_0 : i32, i32
  }
  func.func @transform_6(%arg0: i32) -> (i32, i32) {
    %c0_i32 = arith.constant 0 : i32
    %c0_i32_0 = arith.constant 0 : i32
    %c0_i32_1 = arith.constant 0 : i32
    return %c0_i32, %c0_i32_0 : i32, i32
  }
  func.func @transform_7(%arg0: i32) -> (i32, i32) {
    %c0_i32 = arith.constant 0 : i32
    %c0_i32_0 = arith.constant 0 : i32
    %c0_i32_1 = arith.constant 0 : i32
    return %c0_i32, %c0_i32_0 : i32, i32
  }
  func.func @transform_8(%arg0: i32) -> (i32, i32, i32) {
    %c0_i32 = arith.constant 0 : i32
    %c0_i32_0 = arith.constant 0 : i32
    %c0_i32_1 = arith.constant 0 : i32
    return %arg0, %c0_i32, %c0_i32_0 : i32, i32, i32
  }
}

</mosaic_0001>

<bundles_post_ra>
// kernel: tpu_custom_call.1
= control target key start
LH: loop header
LB: loop body
LE: loop exit
PB: predicated region body
PF: predicated region fallthrough
CT: control target
= control target key end

     0   :  { %s2638_s27 = smov 0   ;;  %s2933_s0 = inlined_call_operand.vmem [shape: f32[2,48,4], index: 0, kind: input, shape index: {}]   ;;  %s2934_s1 = inlined_call_operand.vmem [shape: f32[2,16,3], index: 1, kind: input, shape index: {}]   ;;  %s2935_s2 = inlined_call_operand.vmem [shape: f32[4,16], index: 2, kind: input, shape index: {}]   ;;  %s2936_s3 = inlined_call_operand.vmem [shape: f32[1,16], index: 3, kind: input, shape index: {}]   ;;  %s2937_s4 = inlined_call_operand.vmem [shape: f32[3,16], index: 4, kind: input, shape index: {}]   ;;  %s2938_s5 = inlined_call_operand.vmem [shape: f32[1,16], index: 5, kind: input, shape index: {}]   ;;  %s2939_s6 = inlined_call_operand.vmem [shape: f32[1,16], index: 6, kind: input, shape index: {}]   ;;  %s2940_s7 = inlined_call_operand.vmem [shape: f32[16,16], index: 7, kind: input, shape index: {}]   ;;  %s2941_s8 = inlined_call_operand.vmem [shape: f32[2,3,16], index: 8, kind: output, shape index: {}]  }
   0x1 LB: > { %s2243_s28 = sadd.s32 4294967295, %s2585_s27   ;;  %p2247_p0 = scmp.ge.s32.totalorder %s2585_s27, 1  ;;  %s2585_s27 = sphi %s2638_s27, %s18_s27  }
   0x2   : > { %p272_p1 = scmp.lt.s32.totalorder %s2585_s27, 3 }
   0x4   : > { %p273_p2 = pnand %p2247_p0, %p272_p1 }
   0x5   : > { %v332_v0 = vld [vmem:[%s2935_s2] sm:$0xf] (!%p273_p2)  ;;  %vm352_vm0 = vcmask (!%p273_p2), 1043456   ;;  %p310_p3 = scmp.lt.s32.totalorder (!%p273_p2), %s2243_s28, 1  ;;  %vm1025_vm1 = vcmask (!%p273_p2), 1042432   ;;  %v2587_v5 = vmov (!%p273_p2), 0  }
   0x6   : > { %276 = sbr.rel (%p273_p2) target bundleno = 647 (0x287), region = 52  ;;  %v354_v1 = vsel (!%p273_p2), %vm352_vm0, %v332_v0, 0  ;;  %v1017_v2 = vld [vmem:[%s2937_s4] sm:$0x7] (!%p273_p2)  ;;  %2557 = vset.pattern.permute.xlu0 (!%p273_p2), %v2587_v5  ;;  %v2588_v6 = vmov (!%p273_p2), 1   ;;  %vm1018_vm2 = vcmask (!%p273_p2), 23552  }
   0x7   : > { %v2652_v3 = vand.u32 (!%p273_p2), 4294901760, %v354_v1  ;;  %v1027_v4 = vsel (!%p273_p2), %vm1025_vm1, %v1017_v2, 0  ;;  %2558 = vset.pattern.permute.xlu1 (!%p273_p2), %v2588_v6  ;;  %vm333_vm3 = vcmask (!%p273_p2), 31744   ;;  %v2589_v57 = vmov (!%p273_p2), 2  }
   0x8   : > { %v2656_v7 = vand.u32 (!%p273_p2), 4294901760, %v1027_v4  ;;  %vm2591_vm4 = vmmov (!%p273_p2), 0   ;;  %vm1547_vm5 = vcmask (!%p273_p2), 130048   ;;  %vm1708_vm6 = vcmask (!%p273_p2), 1040384  }
   0x9   : > { %v484_v8 = vsub.f32 (!%p273_p2), %v354_v1, %v2652_v3  ;;  %2336 = vmatprep.subr.mxu1 (!%p273_p2), %v2652_v3  ;;  %vm1710_vm7 = vcmask (!%p273_p2), 1041408   ;;  %vm2176_vm8 = vcmask (!%p273_p2), 124928  }
   0xa   : > { %2337 = vmatpush3.msra.mxu1 (!%p273_p2), %v2652_v3  ;;  %v2667_v9 = vsub.f32 (!%p273_p2), %v1027_v4, %v2656_v7 }
   0xb   : > { %v2669_v10 = vand.u32 (!%p273_p2), 4294901760, %v484_v8  ;;  %2402 = vmatprep.subr.mxu1 (!%p273_p2), %v2656_v7 }
   0xc   : > { %v2679_v18 = vand.u32 (!%p273_p2), 4294901760, %v2667_v9 }
   0xd   : > { %s2943_s28 = smov (!%p310_p3, %s2243_s28), 1  ;;  %v486_v19 = vsub.f32 %v484_v8, %v2669_v10 }
   0xe   : > { %s2542_s11 = smul.u32 48, %s2943_s28  ;;  %s2257_s12 = sshll.u32 %s2943_s28, 4  ;;  %v1119_v56 = vsub.f32 %v2667_v9, %v2679_v18 }
   0xf   : > { %s319_s15 = scalar_lea.vmem %s2934_s1, %s2257_s12  ;;  %v487_v30 = vand.u32 4294901760, %v486_v19  ;;  %s2251_s9 = sshll.u32 %s2943_s28, 2 }
  0x10   : > { %s314_s18 = scalar_lea.vmem %s2933_s0, %s2542_s11  ;;  %v2675_v11 = vld [vmem:[%s319_s15] sm:$0xff]  ;;  %v331_v12 = vld [vmem:[%s319_s15 + $0x8] sm:$0xff]  ;;  %v1120_v63 = vand.u32 4294901760, %v1119_v56  ;;  %s323_s12 = scalar_lea.vmem %s2941_s8, %s2251_s9 }
  0x11   : > { %v324_v13 = vld [vmem:[%s314_s18] sm:$0xff]  ;;  %v325_v14 = vld [vmem:[%s314_s18 + $0x8] sm:$0xff]  ;;  %v326_v15 = vld [vmem:[%s314_s18 + $0x10] sm:$0xff]  ;;  %v1020_v16 = vsel %vm1018_vm2, %v2675_v11, 0  ;;  %v1023_v17 = vsel %vm1018_vm2, %v331_v12, 0  ;;  %1522 = vperm.xlu0 %2557, %v2675_v11   ;;  %1597 = vperm.xlu1 %2558, %v2675_v11  }
  0x12   : > { %v335_v20 = vsel %vm333_vm3, %v324_v13, 0  ;;  %v338_v21 = vsel %vm333_vm3, %v325_v14, 0  ;;  %v341_v22 = vsel %vm333_vm3, %v326_v15, 0  ;;  %v327_v23 = vld [vmem:[%s314_s18 + $0x18] sm:$0xff]  ;;  %v328_v24 = vld [vmem:[%s314_s18 + $0x20] sm:$0xff]  ;;  %v329_v25 = vld [vmem:[%s314_s18 + $0x28] sm:$0xff]  ;;  %2347 = vmatprep.subr.mxu0 %v487_v30 }
  0x13   : > { %v2687_v26 = vand.u32 4294901760, %v335_v20  ;;  %v2689_v27 = vand.u32 4294901760, %v338_v21  ;;  %v2691_v28 = vand.u32 4294901760, %v341_v22  ;;  %v344_v29 = vsel %vm333_vm3, %v327_v23, 0  ;;  %2348 = vmatpush3.msra.mxu0 %v487_v30  ;;  %v2252_v56 = vld [vmem:[%s2938_s5] ss:$0 sm:$0xff] }
  0x14   : > { %v2694_v31 = vand.u32 4294901760, %v344_v29  ;;  %v347_v32 = vsel %vm333_vm3, %v328_v24, 0  ;;  %v350_v33 = vsel %vm333_vm3, %v329_v25, 0  ;;  %v2715_v40 = vand.u32 4294901760, %v1020_v16  ;;  %2358 = vmatprep.subr.mxu0 %v484_v8 }
  0x15   : > { %2349 = vmatprep.mubr.f32.mxu0 %v2687_v26  ;;  %v2700_v34 = vsub.f32 %v335_v20, %v2687_v26  ;;  %v2703_v35 = vsub.f32 %v338_v21, %v2689_v27  ;;  %v2705_v36 = vand.u32 4294901760, %v347_v32  ;;  %v2707_v37 = vand.u32 4294901760, %v350_v33  ;;  %1526 = vperm.xlu0 %2557, %v331_v12  }
  0x16   : > { %v2710_v38 = vsub.f32 %v341_v22, %v2691_v28  ;;  %v2713_v39 = vsub.f32 %v344_v29, %v2694_v31  ;;  %v2717_v41 = vand.u32 4294901760, %v1023_v17  ;;  %1601 = vperm.xlu1 %2558, %v331_v12   ;;  %2350 = vmatmul.mubr.f32.vlgmr.msra.gmra.mrb[0].mxu0 %v2689_v27  ;;  %v2731_v48 = vsub.f32 %v1020_v16, %v2715_v40 }
  0x17   : > { %v424_v42 = vand.u32 4294901760, %v2700_v34  ;;  %v434_v43 = vand.u32 4294901760, %v2703_v35  ;;  %v2722_v44 = vsub.f32 %v347_v32, %v2705_v36  ;;  %v2725_v45 = vsub.f32 %v350_v33, %v2707_v37  ;;  %2352 = vmatprep.mubr.f32.mxu0 %v2691_v28  ;;  %2359 = vmatpush3.msra.mxu0 %v484_v8  ;;  %v2836_v32 = vld [vmem:[%s2936_s3] ss:$0 sm:$0xff] }
  0x18   : > { %v444_v46 = vand.u32 4294901760, %v2710_v38  ;;  %v454_v47 = vand.u32 4294901760, %v2713_v39  ;;  %v2742_v52 = vsub.f32 %v1023_v17, %v2717_v41  ;;  %2369 = vmatprep.subr.mxu0 %v2652_v3  ;;  %v1097_v61 = vand.u32 4294901760, %v2731_v48 }
  0x19   : > { %v425_v49 = vsub.f32 %v2700_v34, %v424_v42  ;;  %v435_v50 = vsub.f32 %v2703_v35, %v434_v43  ;;  %v464_v51 = vand.u32 4294901760, %v2722_v44  ;;  %v474_v55 = vand.u32 4294901760, %v2725_v45  ;;  %2559 = vset.pattern.permute.xlu0 %v2589_v57 }
  0x1a   : > { %v445_v53 = vsub.f32 %v2710_v38, %v444_v46  ;;  %v455_v54 = vsub.f32 %v2713_v39, %v454_v47  ;;  %2560 = vset.pattern.permute.xlu1 %v2589_v57  ;;  %2353 = vmatmul.mubr.f32.gmra.mrb[2].mxu0 %v2694_v31  ;;  %v1107_v2 = vand.u32 4294901760, %v2742_v52  ;;  %v1098_v5 = vsub.f32 %v2731_v48, %v1097_v61 }
  0x1b   : > { %v426_v58 = vand.u32 4294901760, %v425_v49  ;;  %v436_v59 = vand.u32 4294901760, %v435_v50  ;;  %v465_v60 = vsub.f32 %v2722_v44, %v464_v51  ;;  %1657 = vperm.xlu1 %2560, %v331_v12   ;;  %1653 = vperm.xlu0 %2559, %v2675_v11   ;;  %v475_v1 = vsub.f32 %v2725_v45, %v474_v55 }
  0x1c   : > { %v446_v62 = vand.u32 4294901760, %v445_v53  ;;  %2355 = vmatprep.mubr.f32.mxu0 %v2705_v36  ;;  %v456_v0 = vand.u32 4294901760, %v455_v54  ;;  %v1108_v8 = vsub.f32 %v2742_v52, %v1107_v2  ;;  %v1099_v11 = vand.u32 4294901760, %v1098_v5 }
  0x1d   : > { %2338 = vmatprep.mubr.f32.mxu1 %v426_v58  ;;  %v466_v4 = vand.u32 4294901760, %v465_v60  ;;  %v476_v6 = vand.u32 4294901760, %v475_v1  ;;  %v2592_v14 = vmov 0.0  }
  0x1e   : > { %2339 = vmatmul.mubr.f32.vlgmr.msra.gmra.mrb[0].mxu1 %v436_v59  ;;  %2356 = vmatmul.mubr.f32.gmra.mrb[4].mxu0 %v2707_v37  ;;  %v1109_v12 = vand.u32 4294901760, %v1108_v8 }
  0x1f   : > { %2403 = vmatpush3.msra.mxu1 %v2656_v7  ;;  %2341 = vmatprep.mubr.f32.mxu1 %v446_v62  ;;  %v2253_v62 = vld [vmem:[%s2939_s6] ss:$0 sm:$0xff] }
  0x20   : > { %2407 = vmatprep.subr.mxu1 %v1120_v63  ;;  %2360 = vmatprep.mubr.f32.mxu0 %v2700_v34 }
  0x22   : > { %2342 = vmatmul.mubr.f32.gmra.mrb[2].mxu1 %v456_v0  ;;  %2361 = vmatmul.mubr.f32.vlgmr.msra.gmra.mrb[0].mxu0 %v2703_v35 }
  0x23   : > { %2344 = vmatprep.mubr.f32.mxu1 %v466_v4  ;;  %2363 = vmatprep.mubr.f32.mxu0 %v2710_v38 }
  0x24   : > { %2370 = vmatpush3.msra.mxu0 %v2652_v3 }
  0x25   : > { %2380 = vmatprep.subr.mxu0 %v2669_v10 }
  0x26   : > { %2345 = vmatmul.mubr.f32.gmra.mrb[4].mxu1 %v476_v6  ;;  %2364 = vmatmul.mubr.f32.gmra.mrb[2].mxu0 %v2713_v39 }
  0x27   : > { %2404 = vmatprep.mubr.f32.mxu1 %v1099_v11  ;;  %2366 = vmatprep.mubr.f32.mxu0 %v2722_v44 }
  0x2a   : > { %2405 = vmatmul.mubr.f32.vlgmr.msra.gmra.mrb[6].mxu1 %v1109_v12  ;;  %2367 = vmatmul.mubr.f32.gmra.mrb[4].mxu0 %v2725_v45 }
  0x2b   : > { %2408 = vmatpush3.msra.mxu1 %v1120_v63  ;;  %2409 = vmatprep.mubr.f32.mxu1 %v2715_v40 }
  0x2c   : > { %2412 = vmatprep.subr.mxu1 %v2667_v9  ;;  %2371 = vmatprep.mubr.f32.mxu0 %v424_v42 }
  0x2e   : > { %2372 = vmatmul.mubr.f32.vlgmr.msra.gmra.mrb[0].mxu0 %v434_v43 }
  0x2f   : > { %2374 = vmatprep.mubr.f32.mxu0 %v444_v46  ;;  %2381 = vmatpush3.msra.mxu0 %v2669_v10  ;;  %v2590_v10 = vmov 0.0|0.0  }
  0x30   : > { %2391 = vmatprep.subr.mxu0 %v2652_v3 }
  0x32   : > { %2410 = vmatmul.mubr.f32.vlgmr.msra.gmra.mrb[6].mxu1 %v2717_v41  ;;  %2375 = vmatmul.mubr.f32.gmra.mrb[2].mxu0 %v454_v47 }
  0x33   : > { %2413 = vmatpush3.msra.mxu1 %v2667_v9  ;;  %2414 = vmatprep.mubr.f32.mxu1 %v2731_v48  ;;  %v1713_v9 = vld [vmem:[%s2940_s7 + $0x8] sm:$0xff] }
  0x34   : > { %2417 = vmatprep.subr.mxu1 %v2656_v7  ;;  %2377 = vmatprep.mubr.f32.mxu0 %v464_v51  ;;  %v1721_v13 = vand.u32 4294901760, %v1713_v9 }
  0x36   : > { %2378 = vmatmul.mubr.f32.gmra.mrb[4].mxu0 %v474_v55  ;;  %v2821_v19 = vsub.f32 %v1713_v9, %v1721_v13 }
  0x37   : > { %2382 = vmatprep.mubr.f32.mxu0 %v2687_v26 }
  0x38   : > { %v1804_v25 = vand.u32 4294901760, %v2821_v19 }
  0x3a   : > { %2415 = vmatmul.mubr.f32.vlgmr.msra.gmra.mrb[6].mxu1 %v2742_v52  ;;  %2383 = vmatmul.mubr.f32.vlgmr.msra.gmra.mrb[0].mxu0 %v2689_v27 }
  0x3b   : > { %2418 = vmatpush3.msra.mxu1 %v2656_v7  ;;  %2419 = vmatprep.mubr.f32.mxu1 %v1097_v61 }
  0x3c   : > { %2422 = vmatprep.subr.mxu1 %v2679_v18  ;;  %2385 = vmatprep.mubr.f32.mxu0 %v2691_v28 }
  0x3d   : > { %2392 = vmatpush3.msra.mxu0 %v2652_v3  ;;  %v1712_v3 = vld [vmem:[%s2940_s7] sm:$0xff] }
  0x3e   : > { %2386 = vmatmul.mubr.f32.gmra.mrb[2].mxu0 %v2694_v31 }
  0x3f   : > { %2388 = vmatprep.mubr.f32.mxu0 %v2705_v36 }
  0x42   : > { %2420 = vmatmul.mubr.f32.vlgmr.msra.gmra.mrb[6].mxu1 %v1107_v2  ;;  %2389 = vmatmul.mubr.f32.gmra.mrb[4].mxu0 %v2707_v37 }
  0x43   : > { %2423 = vmatpush3.msra.mxu1 %v2679_v18  ;;  %2424 = vmatprep.mubr.f32.mxu1 %v2715_v40 }
  0x44   : > { %2427 = vmatprep.subr.mxu1 %v2656_v7  ;;  %2393 = vmatprep.mubr.f32.mxu0 %v2687_v26 }
  0x46   : > { %2394 = vmatmul.mubr.f32.vlgmr.msra.gmra.mrb[0].mxu0 %v2689_v27  ;;  %v1805_v27 = vsub.f32 %v2821_v19, %v1804_v25 }
  0x47   : > { %2396 = vmatprep.mubr.f32.mxu0 %v2691_v28 }
  0x48   : > { %v1806_v29 = vand.u32 4294901760, %v1805_v27 }
  0x4a   : > { %2425 = vmatmul.mubr.f32.vlgmr.msra.gmra.mrb[6].mxu1 %v2717_v41  ;;  %2397 = vmatmul.mubr.f32.gmra.mrb[2].mxu0 %v2694_v31 }
  0x4b   : > { %2428 = vmatpush3.msra.mxu1 %v2656_v7  ;;  %2429 = vmatprep.mubr.f32.mxu1 %v2715_v40  ;;  %v1718_v7 = vand.u32 4294901760, %v1712_v3 }
  0x4c   : > { %2399 = vmatprep.mubr.f32.mxu0 %v2705_v36  ;;  %2474 = vmatprep.subr.bf16.mxu1 %v2590_v10 }
  0x4d   : > { %v2817_v17 = vpack.c.bf16 %v1721_v13, %v1718_v7  ;;  %v2819_v18 = vsub.f32 %v1712_v3, %v1718_v7 }
  0x4e   : > { %2400 = vmatmul.mubr.f32.gmra.mrb[4].mxu0 %v2707_v37 }
  0x4f   : > { %v1797_v24 = vand.u32 4294901760, %v2819_v18  ;;  %v2481_v31 = vpack.c.bf16 %v2821_v19, %v2819_v18 }
  0x51   : > { %v1798_v26 = vsub.f32 %v2819_v18, %v1797_v24  ;;  %v2850_v48 = vpack.c.bf16 %v1804_v25, %v1797_v24 }
  0x52   : > { %2430 = vmatmul.mubr.f32.vlgmr.msra.gmra.mrb[6].mxu1 %v2717_v41 }
  0x53   : > { %2436 = vmatprep.mubr.msk.f32.mxu1 %vm2591_vm4, %v2592_v14  ;;  %2476 = vmatpush3.bf16.msra.mxu1 %v2817_v17  ;;  %v1799_v28 = vand.u32 4294901760, %v1798_v26 }
  0x54   : > { %2477 = vmatprep.subr.bf16.mxu1 %v2590_v10 }
  0x55   : > { %v2829_v30 = vpack.c.bf16 %v1806_v29, %v1799_v28 }
  0x90   : > { %v1598_v33 = vpop.permute.xlu1 %1597  ;;  %v1523_v34 = vpop.permute.xlu0 %1522 }
  0x91   : > { %v1581_v35 = vmul.f32 %v2836_v32, %v1523_v34  ;;  %v1637_v45 = vmul.f32 %v2836_v32, %v1598_v33 }
  0x94   : > { %v2848_v47 = vpop.permute.xlu0 %1526 }
  0x95   : > { %v2843_v41 = vpop.permute.xlu1 %1601 }
  0x9a   : > { %v2856_v53 = vpop.permute.xlu1 %1657  ;;  %v2863_v57 = vpop.permute.xlu0 %1653 }
  0xf1   : > { %v2340_v15 = vpop.f32.mrb[0].mxu1 }
  0xf2   : > { %v428_v16 = vpop.f32.mrb[1].mxu1 }
  0xf5   : > { %v2343_v20 = vpop.f32.mrb[2].mxu1 }
  0xf6   : > { %v448_v21 = vpop.f32.mrb[3].mxu1 }
  0xf9   : > { %v2346_v22 = vpop.f32.mrb[4].mxu1 }
  0xfa   : > { %v468_v23 = vpop.f32.mrb[5].mxu1 }
 0x119   : > { %v2395_v36 = vpop.f32.mrb[0].mxu0 }
 0x11a   : > { %v2839_v37 = vadd.f32 %v2395_v36, %v2340_v15  ;;  %v983_v38 = vpop.f32.mrb[1].mxu0 }
 0x11b   : > { %v2493_v39 = vadd.f32 %v983_v38, %v428_v16 }
 0x11d   : > { %v2841_v40 = vadd.f32 %v2493_v39, %v1581_v35  ;;  %v2398_v42 = vpop.f32.mrb[2].mxu0 }
 0x11e   : > { %v2845_v43 = vadd.f32 %v2398_v42, %v2343_v20  ;;  %v995_v44 = vpop.f32.mrb[3].mxu0 }
 0x11f   : > { %v2495_v46 = vadd.f32 %v995_v44, %v448_v21 }
 0x121   : > { %v2852_v49 = vadd.f32 %v2495_v46, %v1637_v45  ;;  %v2401_v50 = vpop.f32.mrb[4].mxu0 }
 0x122   : > { %v2854_v51 = vadd.f32 %v2401_v50, %v2346_v22  ;;  %v1007_v52 = vpop.f32.mrb[5].mxu0 }
 0x123   : > { %v2858_v54 = vadd.f32 %v1007_v52, %v468_v23 }
 0x125   : > { %v2431_v55 = vpop.f32.mrb[6].mxu1 }
 0x126   : > { %v1530_v58 = vmul.f32 %v2431_v55, %v2848_v47  ;;  %v1605_v59 = vmul.f32 %v2431_v55, %v2843_v41  ;;  %v1661_v60 = vmul.f32 %v2431_v55, %v2856_v53  ;;  %v1508_v61 = vpop.f32.mrb[7].mxu1 }
 0x127   : > { %v1529_v63 = vmul.f32 %v1523_v34, %v1508_v61  ;;  %v1604_v0 = vmul.f32 %v1598_v33, %v1508_v61  ;;  %v1660_v1 = vmul.f32 %v2863_v57, %v1508_v61 }
 0x128   : > { %v1538_v2 = vmul.f32 %v2252_v56, %v1530_v58  ;;  %v1607_v4 = vmul.f32 %v2252_v56, %v1605_v59  ;;  %v1663_v5 = vmul.f32 %v2252_v56, %v1661_v60 }
 0x129   : > { %v1537_v6 = vmul.f32 %v2252_v56, %v1529_v63  ;;  %v1606_v8 = vmul.f32 %v2252_v56, %v1604_v0  ;;  %v1662_v11 = vmul.f32 %v2252_v56, %v1660_v1 }
 0x12a   : > { %v1546_v12 = vadd.f32 %v2253_v62, %v1538_v2  ;;  %v1609_v3 = vadd.f32 %v2253_v62, %v1607_v4  ;;  %v1665_v9 = vadd.f32 %v2253_v62, %v1663_v5 }
 0x12b   : > { %v1545_v7 = vadd.f32 %v2253_v62, %v1537_v6  ;;  %v1608_v13 = vadd.f32 %v2253_v62, %v1606_v8  ;;  %v1664_v15 = vadd.f32 %v2253_v62, %v1662_v11 }
 0x12c   : > { %v1549_v16 = vsel %vm1547_vm5, %v1546_v12, -inf  ;;  %v1611_v20 = vsel %vm1547_vm5, %v1609_v3, -inf  ;;  %v1667_v21 = vsel %vm1547_vm5, %v1665_v9, -inf }
 0x12d   : > { %v1548_v22 = vsel %vm1547_vm5, %v1545_v7, -inf  ;;  %v1610_v23 = vsel %vm1547_vm5, %v1608_v13, -inf  ;;  %v1666_v24 = vsel %vm1547_vm5, %v1664_v15, -inf }
 0x12e   : > { %v1550_v25 = vmax.f32 %v1548_v22, %v1549_v16  ;;  %v1612_v26 = vmax.f32 %v1610_v23, %v1611_v20  ;;  %v1668_v27 = vmax.f32 %v1666_v24, %v1667_v21 }
 0x130   : > { %v1551_v28 = vrot.slane %v1550_v25, 4  ;;  %v1613_v29 = vrot.slane %v1612_v26, 4  ;;  %v1669_v33 = vrot.slane %v1668_v27, 4 }
 0x132   : > { %v1552_v34 = vmax.f32 %v1550_v25, %v1551_v28  ;;  %v1614_v35 = vmax.f32 %v1612_v26, %v1613_v29  ;;  %v1670_v36 = vmax.f32 %v1668_v27, %v1669_v33 }
 0x134   : > { %v1553_v38 = vrot.slane %v1552_v34, 2  ;;  %v1615_v39 = vrot.slane %v1614_v35, 2  ;;  %v1671_v42 = vrot.slane %v1670_v36, 2 }
 0x136   : > { %v1554_v44 = vmax.f32 %v1552_v34, %v1553_v38  ;;  %v1616_v45 = vmax.f32 %v1614_v35, %v1615_v39  ;;  %v1672_v46 = vmax.f32 %v1670_v36, %v1671_v42 }
 0x138   : > { %v1555_v50 = vrot.slane %v1554_v44, 1  ;;  %v1617_v52 = vrot.slane %v1616_v45, 1  ;;  %v1673_v55 = vrot.slane %v1672_v46, 1 }
 0x13a   : > { %v1556_v56 = vmax.f32 %v1554_v44, %v1555_v50  ;;  %v1618_v58 = vmax.f32 %v1616_v45, %v1617_v52  ;;  %v1674_v59 = vmax.f32 %v1672_v46, %v1673_v55 }
 0x13c   : > { %v1557_v60 = vsub.f32 %v1545_v7, %v1556_v56  ;;  %v1558_v61 = vsub.f32 %v1546_v12, %v1556_v56  ;;  %v1619_v62 = vsub.f32 %v1608_v13, %v1618_v58  ;;  %v1620_v63 = vsub.f32 %v1609_v3, %v1618_v58 }
 0x13d   : > { %v1675_v0 = vsub.f32 %v1664_v15, %v1674_v59  ;;  %v1676_v1 = vsub.f32 %v1665_v9, %v1674_v59 }
 0x13e   : > { %v1559_v2 = vmul.f32 1.442695, %v1557_v60  ;;  %v1561_v4 = vmul.f32 1.442695, %v1558_v61  ;;  %v1621_v5 = vmul.f32 1.442695, %v1619_v62  ;;  %v1582_v60 = vmul.f32 %v2836_v32, %v2848_v47 }
 0x13f   : > { %v1623_v6 = vmul.f32 1.442695, %v1620_v63  ;;  %v1677_v8 = vmul.f32 1.442695, %v1675_v0  ;;  %v1679_v11 = vmul.f32 1.442695, %v1676_v1  ;;  %v1638_v61 = vmul.f32 %v2836_v32, %v2843_v41 }
 0x140   : > { %2561 = vpow2.f32 %v1559_v2  ;;  %v1694_v63 = vmul.f32 %v2836_v32, %v2856_v53  ;;  %v1584_v0 = vadd.f32 %v2839_v37, %v1582_v60 }
 0x141   : > { %2563 = vpow2.f32 %v1561_v4 }
 0x142   : > { %2565 = vpow2.f32 %v1621_v5  ;;  %v1640_v5 = vadd.f32 %v2845_v43, %v1638_v61 }
 0x143   : > { %2567 = vpow2.f32 %v1623_v6  ;;  %v1693_v6 = vmul.f32 %v2836_v32, %v2863_v57 }
 0x144   : > { %2569 = vpow2.f32 %v1677_v8 }
 0x145   : > { %2571 = vpow2.f32 %v1679_v11  ;;  %v1695_v43 = vadd.f32 %v2858_v54, %v1693_v6 }
 0x14a   : > { %v2562_v16 = vpop.eup %2561 }
 0x14b   : > { %v2564_v20 = vpop.eup %2563  ;;  %v1563_v12 = vsel %vm1547_vm5, %v2562_v16, 0.0 }
 0x14c   : > { %v2566_v7 = vpop.eup %2565  ;;  %v1564_v3 = vsel %vm1547_vm5, %v2564_v20, 0.0 }
 0x14d   : > { %v2568_v9 = vpop.eup %2567  ;;  %v1565_v13 = vadd.f32 %v1564_v3, %v1563_v12  ;;  %v1625_v15 = vsel %vm1547_vm5, %v2566_v7, 0.0  ;;  %v1696_v3 = vadd.f32 %v2854_v51, %v1694_v63 }
 0x14e   : > { %v2570_v21 = vpop.eup %2569  ;;  %v1626_v22 = vsel %vm1547_vm5, %v2568_v9, 0.0 }
 0x14f   : > { %v2572_v23 = vpop.eup %2571  ;;  %v1566_v24 = vrot.slane %v1565_v13, 4  ;;  %v1627_v25 = vadd.f32 %v1626_v22, %v1625_v15  ;;  %v1681_v26 = vsel %vm1547_vm5, %v2570_v21, 0.0 }
 0x150   : > { %v1682_v27 = vsel %vm1547_vm5, %v2572_v23, 0.0 }
 0x151   : > { %v1567_v28 = vadd.f32 %v1566_v24, %v1565_v13  ;;  %v1628_v29 = vrot.slane %v1627_v25, 4  ;;  %v1683_v33 = vadd.f32 %v1682_v27, %v1681_v26 }
 0x153   : > { %v1568_v34 = vrot.slane %v1567_v28, 2  ;;  %v1629_v35 = vadd.f32 %v1628_v29, %v1627_v25  ;;  %v1684_v36 = vrot.slane %v1683_v33, 4 }
 0x155   : > { %v1569_v38 = vadd.f32 %v1568_v34, %v1567_v28  ;;  %v1630_v39 = vrot.slane %v1629_v35, 2  ;;  %v1685_v42 = vadd.f32 %v1684_v36, %v1683_v33 }
 0x157   : > { %v1570_v44 = vrot.slane %v1569_v38, 1  ;;  %v1631_v45 = vadd.f32 %v1630_v39, %v1629_v35  ;;  %v1686_v46 = vrot.slane %v1685_v42, 2 }
 0x159   : > { %v1571_v50 = vadd.f32 %v1570_v44, %v1569_v38  ;;  %v1632_v52 = vrot.slane %v1631_v45, 1  ;;  %v1687_v55 = vadd.f32 %v1686_v46, %v1685_v42 }
 0x15b   : > { %2573 = vrcp.f32 %v1571_v50  ;;  %v1633_v56 = vadd.f32 %v1632_v52, %v1631_v45  ;;  %v1688_v58 = vrot.slane %v1687_v55, 1 }
 0x15d   : > { %2575 = vrcp.f32 %v1633_v56  ;;  %v1689_v59 = vadd.f32 %v1688_v58, %v1687_v55 }
 0x15f   : > { %2577 = vrcp.f32 %v1689_v59 }
 0x165   : > { %v2574_v62 = vpop.eup %2573 }
 0x166   : > { %v1573_v1 = vmul.f32 %v2574_v62, %v2562_v16  ;;  %v1574_v2 = vmul.f32 %v2574_v62, %v2564_v20 }
 0x167   : > { %v2576_v4 = vpop.eup %2575 }
 0x168   : > { %v1585_v8 = vmul.f32 %v2841_v40, %v1573_v1  ;;  %v1586_v47 = vmul.f32 %v1584_v0, %v1574_v2  ;;  %v1635_v11 = vmul.f32 %v2576_v4, %v2566_v7  ;;  %v1636_v12 = vmul.f32 %v2576_v4, %v2568_v9 }
 0x169   : > { %v2578_v41 = vpop.eup %2577 }
 0x16a   : > { %v1587_v53 = vsel %vm1547_vm5, %v1585_v8, 0.0  ;;  %v1588_v37 = vsel %vm1547_vm5, %v1586_v47, 0.0  ;;  %v1641_v16 = vmul.f32 %v2852_v49, %v1635_v11  ;;  %v1642_v20 = vmul.f32 %v1640_v5, %v1636_v12 }
 0x16b   : > { %v1589_v13 = vadd.f32 %v1588_v37, %v1587_v53  ;;  %v1691_v15 = vmul.f32 %v2578_v41, %v2570_v21  ;;  %v1692_v32 = vmul.f32 %v2578_v41, %v2572_v23 }
 0x16c   : > { %v1643_v40 = vsel %vm1547_vm5, %v1641_v16, 0.0  ;;  %v1644_v57 = vsel %vm1547_vm5, %v1642_v20, 0.0 }
 0x16d   : > { %v1645_v7 = vadd.f32 %v1644_v57, %v1643_v40  ;;  %v1697_v9 = vmul.f32 %v1695_v43, %v1691_v15  ;;  %v1698_v22 = vmul.f32 %v1696_v3, %v1692_v32  ;;  %v1590_v51 = vrot.slane %v1589_v13, 4 }
 0x16f   : > { %v1699_v24 = vsel %vm1547_vm5, %v1697_v9, 0.0  ;;  %v1591_v25 = vadd.f32 %v1590_v51, %v1589_v13  ;;  %v1646_v26 = vrot.slane %v1645_v7, 4  ;;  %v1700_v49 = vsel %vm1547_vm5, %v1698_v22, 0.0 }
 0x170   : > { %v1701_v27 = vadd.f32 %v1700_v49, %v1699_v24 }
 0x171   : > { %v1592_v28 = vrot.slane %v1591_v25, 2  ;;  %v1647_v54 = vadd.f32 %v1646_v26, %v1645_v7 }
 0x172   : > { %v1702_v29 = vrot.slane %v1701_v27, 4 }
 0x173   : > { %v1593_v21 = vadd.f32 %v1592_v28, %v1591_v25  ;;  %v1648_v23 = vrot.slane %v1647_v54, 2 }
 0x174   : > { %v1703_v33 = vadd.f32 %v1702_v29, %v1701_v27 }
 0x175   : > { %v1594_v34 = vrot.slane %v1593_v21, 1  ;;  %v1649_v35 = vadd.f32 %v1648_v23, %v1647_v54 }
 0x176   : > { %v1704_v36 = vrot.slane %v1703_v33, 2 }
 0x177   : > { %v1595_v38 = vadd.f32 %v1594_v34, %v1593_v21  ;;  %v1650_v39 = vrot.slane %v1649_v35, 1 }
 0x178   : > { %v1705_v42 = vadd.f32 %v1704_v36, %v1703_v33 }
 0x179   : > { %v1651_v44 = vadd.f32 %v1650_v39, %v1649_v35 }
 0x17a   : > { %v1706_v45 = vrot.slane %v1705_v42, 1 }
 0x17b   : > { %v1709_v46 = vsel %vm1708_vm6, %v1595_v38, %v1651_v44 }
 0x17c   : > { %v1707_v50 = vadd.f32 %v1706_v45, %v1705_v42 }
 0x17e   : > { %v1711_v52 = vsel %vm1710_vm7, %v1709_v46, %v1707_v50 }
 0x17f   : > { %v1715_v55 = vsel %vm1547_vm5, %v1711_v52, 0 }
 0x180   : > { %v1784_v56 = vand.u32 4294901760, %v1715_v55 }
 0x182   : > { %v1785_v58 = vsub.f32 %v1715_v55, %v1784_v56 }
 0x184   : > { %v1786_v59 = vand.u32 4294901760, %v1785_v58 }
 0x186   : > { %v1787_v60 = vsub.f32 %v1785_v58, %v1786_v59 }
 0x188   : > { %v1788_v61 = vand.u32 4294901760, %v1787_v60 }
 0x18a   : > { %2437 = vmatmul.mubr.f32.vlgmr.msra.gmra.mrb[8].mxu1 %v1788_v61 }
 0x18b   : > { %2479 = vmatpush3.bf16.msra.mxu1 %v2829_v30  ;;  %2443 = vmatprep.mubr.msk.f32.mxu1 %vm2591_vm4, %v2592_v14 }
 0x18c   : > { %2480 = vmatprep.subr.bf16.mxu1 %v2590_v10 }
 0x192   : > { %2444 = vmatmul.mubr.f32.vlgmr.msra.gmra.mrb[8].mxu1 %v1784_v56 }
 0x193   : > { %2482 = vmatpush3.bf16.msra.mxu1 %v2481_v31  ;;  %2450 = vmatprep.mubr.msk.f32.mxu1 %vm2591_vm4, %v2592_v14 }
 0x194   : > { %2483 = vmatprep.subr.bf16.mxu1 %v2590_v10 }
 0x19a   : > { %2451 = vmatmul.mubr.f32.vlgmr.msra.gmra.mrb[8].mxu1 %v1785_v58 }
 0x19b   : > { %2485 = vmatpush3.bf16.msra.mxu1 %v2817_v17  ;;  %2457 = vmatprep.mubr.msk.f32.mxu1 %vm2591_vm4, %v2592_v14 }
 0x19c   : > { %2486 = vmatprep.subr.bf16.mxu1 %v2590_v10 }
 0x1a2   : > { %2458 = vmatmul.mubr.f32.vlgmr.msra.gmra.mrb[8].mxu1 %v1786_v59 }
 0x1a3   : > { %2488 = vmatpush3.bf16.msra.mxu1 %v2850_v48  ;;  %2464 = vmatprep.mubr.msk.f32.mxu1 %vm2591_vm4, %v2592_v14 }
 0x1a4   : > { %2489 = vmatprep.subr.bf16.mxu1 %v2590_v10 }
 0x1aa   : > { %2465 = vmatmul.mubr.f32.vlgmr.msra.gmra.mrb[8].mxu1 %v1784_v56 }
 0x1ab   : > { %2491 = vmatpush3.bf16.msra.mxu1 %v2817_v17  ;;  %2471 = vmatprep.mubr.msk.f32.mxu1 %vm2591_vm4, %v2592_v14 }
 0x1b2   : > { %2472 = vmatmul.mubr.f32.vlgmr.msra.gmra.mrb[8].mxu1 %v1784_v56 }
 0x285   : > { %v2172_v18 = vpop.f32.mrb[8].mxu1 }
 0x286   : > { %2177 = vst.msk [vmem:[%s323_s12] sm:$0x7] %vm2176_vm8, %v2172_v18  ;;  %v2473_v19 = vpop.f32.mrb[9].mxu1 }
 0x287 PF: > { %s18_s27 = sadd.s32 1, %s2585_s27  }
 0x288   : > { %p15_p4 = scmp.ge.s32.totalorder %s18_s27, 4  }
 0x28a   :  { %17 = sbr.rel (!%p15_p4) target bundleno = 1 (0x1), region = 85 }

</bundles_post_ra>
